<compile_context>
chip_gen: v7x
topology: tpu7x:2x2x1
jax: 0.10.0
libtpu: 0.0.40
codegen_flags: <defaults>
</compile_context>

<pallas_src>
import functools

import jax
import jax.numpy as jnp
from jax.experimental import pallas as pl
from jax.experimental.pallas import tpu as pltpu

BN_EPS = 1e-5
LANE = 128


def _round_up(x, m):
    return (x + m - 1) // m * m


# --------------------------------------------------------------------------
# Pass 1: conv matmul + per-channel batch-statistics accumulation
# --------------------------------------------------------------------------
def _conv_stats_kernel(xcol_ref, w_ref, y_ref, stats_ref, sum_ref, sq_ref,
                       *, m_true):
    i = pl.program_id(0)

    @pl.when(i == 0)
    def _():
        sum_ref[...] = jnp.zeros_like(sum_ref)
        sq_ref[...] = jnp.zeros_like(sq_ref)

    # MXU matmul with f32 accumulation.
    y = jnp.dot(xcol_ref[...], w_ref[...], preferred_element_type=jnp.float32)
    y_ref[...] = y

    # Per-channel sum / sum-of-squares.  Zero-padded M rows produce y == 0
    # (no conv bias), so they add nothing; the true M is the denominator.
    sum_ref[...] += jnp.sum(y, axis=0, keepdims=True)
    sq_ref[...] += jnp.sum(y * y, axis=0, keepdims=True)

    @pl.when(i == pl.num_programs(0) - 1)
    def _():
        inv_m = 1.0 / m_true
        mean = sum_ref[...] * inv_m
        var = sq_ref[...] * inv_m - mean * mean
        inv_std = jax.lax.rsqrt(var + BN_EPS)
        stats_ref[...] = jnp.concatenate([mean, inv_std], axis=0)


# --------------------------------------------------------------------------
# Pass 2: normalize + affine + optional ReLU
# --------------------------------------------------------------------------
def _bn_apply_kernel(y_ref, stats_ref, gb_ref, out_ref, *, is_relu):
    mean = stats_ref[0:1, :]
    inv_std = stats_ref[1:2, :]
    scale = inv_std * gb_ref[0:1, :]      # inv_std * gamma
    shift = gb_ref[1:2, :]                # beta
    out = (y_ref[...] - mean) * scale + shift
    if is_relu:
        out = jnp.maximum(out, 0.0)
    out_ref[...] = out.astype(out_ref.dtype)


# --------------------------------------------------------------------------
# Wrapper
# --------------------------------------------------------------------------
def conv_bn_layer(x_nchw, weight, bias, gamma, beta, *,
                  kernel_size, stride=1, groups=1, is_relu=False,
                  block_m=512, compute_dtype=None):
    """Forward pass of ConvBNLayer.

    x_nchw : (N, Cin, H, W)             float32
    weight : (Cout, Cin//groups, K, K)  PyTorch OIHW layout
    bias, gamma, beta : (Cout,)
    """
    if groups != 1:
        # TODO(synk): grouped convolution not implemented in this kernel.
        raise NotImplementedError("groups > 1 not supported")
    # Conv bias is mathematically cancelled by training-mode BN mean
    # subtraction, so it is not applied (saves a broadcast add per tile).
    del bias

    N, Cin, H, W = x_nchw.shape
    Cout = weight.shape[0]
    K = kernel_size
    p = (K - 1) // 2
    OH = (H + 2 * p - K) // stride + 1
    OW = (W + 2 * p - K) // stride + 1
    M = N * OH * OW
    KKC = K * K * Cin

    # Lane-dense output channels (multiple of 128 lanes -> unmasked stores).
    Cpad = _round_up(max(Cout, LANE), LANE)
    # Tile of the M dimension (multiple of 8 sublanes).
    TM = min(_round_up(block_m, 8), _round_up(M, 8))
    nm = (M + TM - 1) // TM
    M_pad = nm * TM

    # ---- glue: NCHW -> NHWC, spatial pad, im2col patch extraction ----------
    # TODO(synk): fold the K*K shifted-window (im2col) expansion into the
    # kernel (manual DMA over the padded NHWC input) to avoid the K*K-times
    # HBM duplication of the input; it is kept in the wrapper here.
    x = jnp.transpose(x_nchw, (0, 2, 3, 1))                       # (N, H, W, Cin)
    xp = jnp.pad(x, ((0, 0), (p, p), (p, p), (0, 0)))
    patches = []
    for kh in range(K):
        for kw in range(K):
            patches.append(
                xp[:, kh:kh + (OH - 1) * stride + 1:stride,
                      kw:kw + (OW - 1) * stride + 1:stride, :])
    # column ordering: ((kh*K + kw)*Cin + cin)
    xcol = jnp.concatenate(patches, axis=-1).reshape(M, KKC)
    if M_pad != M:
        # Zero rows: contribute 0 to sum / sum-of-squares (no bias), and the
        # statistics use the true M as denominator, so they stay unbiased.
        xcol = jnp.pad(xcol, ((0, M_pad - M), (0, 0)))

    # weight (Cout, Cin, K, K) -> (K*K*Cin, Cout), zero-padded to Cpad lanes.
    w_flat = jnp.transpose(weight, (2, 3, 1, 0)).reshape(KKC, Cout)
    w_flat = jnp.pad(w_flat, ((0, 0), (0, Cpad - Cout)))

    if compute_dtype is not None:
        # Optional bf16 MXU inputs (v6e/v7x); accumulation / BN stay in f32.
        xcol = xcol.astype(compute_dtype)
        w_flat = w_flat.astype(compute_dtype)

    # Consolidated per-channel affine params: row 0 = gamma, row 1 = beta.
    gb = jnp.stack([jnp.pad(gamma, (0, Cpad - Cout)),
                    jnp.pad(beta, (0, Cpad - Cout))], axis=0).astype(jnp.float32)

    # ---- pass 1: conv matmul + batch-stat accumulation ----------------------
    y, stats = pl.pallas_call(
        functools.partial(_conv_stats_kernel, m_true=float(M)),
        out_shape=(jax.ShapeDtypeStruct((M_pad, Cpad), jnp.float32),
                   jax.ShapeDtypeStruct((2, Cpad), jnp.float32)),
        grid_spec=pltpu.PrefetchScalarGridSpec(
            num_scalar_prefetch=0,
            grid=(nm,),
            in_specs=[pl.BlockSpec((TM, KKC), lambda i: (i, 0)),
                      pl.BlockSpec((KKC, Cpad), lambda i: (0, 0))],
            out_specs=[pl.BlockSpec((TM, Cpad), lambda i: (i, 0)),
                       pl.BlockSpec((2, Cpad), lambda i: (0, 0))],
            scratch_shapes=[pltpu.VMEM((1, Cpad), jnp.float32),
                            pltpu.VMEM((1, Cpad), jnp.float32)]),
        compiler_params=pltpu.CompilerParams(
            dimension_semantics=("arbitrary",)),
    )(xcol, w_flat)

    # ---- pass 2: normalize + scale/shift + ReLU (parallel over M tiles) -----
    out = pl.pallas_call(
        functools.partial(_bn_apply_kernel, is_relu=is_relu),
        out_shape=jax.ShapeDtypeStruct((M_pad, Cpad), x_nchw.dtype),
        grid_spec=pltpu.PrefetchScalarGridSpec(
            num_scalar_prefetch=0,
            grid=(nm,),
            in_specs=[pl.BlockSpec((TM, Cpad), lambda i: (i, 0)),
                      pl.BlockSpec((2, Cpad), lambda i: (0, 0)),
                      pl.BlockSpec((2, Cpad), lambda i: (0, 0))],
            out_specs=pl.BlockSpec((TM, Cpad), lambda i: (i, 0))),
        compiler_params=pltpu.CompilerParams(
            dimension_semantics=("parallel",)),
    )(y, stats, gb)

    # ---- glue: (M_pad, Cpad) -> (N, Cout, OH, OW) ---------------------------
    out = out[:M, :Cout].reshape(N, OH, OW, Cout)
    return jnp.transpose(out, (0, 3, 1, 2))


# --------------------------------------------------------------------------
# Pure-JAX reference (mirrors torch Conv2d + BatchNorm2d(train) + ReLU)
# --------------------------------------------------------------------------
def conv_bn_reference(x_nchw, weight, bias, gamma, beta, *,
                      kernel_size, stride=1, is_relu=False):
    p = (kernel_size - 1) // 2
    y = jax.lax.conv_general_dilated(
        x_nchw, weight, window_strides=(stride, stride),
        padding=[(p, p), (p, p)],
        dimension_numbers=("NCHW", "OIHW", "NCHW"))
    y = y + bias.reshape(1, -1, 1, 1)
    mean = jnp.mean(y, axis=(0, 2, 3), keepdims=True)
    var = jnp.mean((y - mean) ** 2, axis=(0, 2, 3), keepdims=True)
    y = (y - mean) * jax.lax.rsqrt(var + BN_EPS)
    y = y * gamma.reshape(1, -1, 1, 1) + beta.reshape(1, -1, 1, 1)
    if is_relu:
        y = jnp.maximum(y, 0.0)
    return y


if __name__ == "__main__":
    # Small shapes consistent with the module: batch=2, in_ch=4, out_ch=8,
    # 16x16 spatial, 3x3 conv, stride=1, groups=1, relu on.
    N, CIN, H, W = 2, 4, 16, 16
    COUT, K = 8, 3
    IS_RELU = True

    key = jax.random.PRNGKey(0)
    kx, kw, kb, kg, kbe = jax.random.split(key, 5)

    x = jax.random.normal(kx, (N, CIN, H, W), dtype=jnp.float32)
    fan_in = CIN * K * K
    bound = 1.0 / (fan_in ** 0.5)
    weight = jax.random.uniform(kw, (COUT, CIN, K, K), jnp.float32, -bound, bound)
    bias = jax.random.uniform(kb, (COUT,), jnp.float32, -bound, bound)
    gamma = 1.0 + 0.1 * jax.random.normal(kg, (COUT,), jnp.float32)
    beta = 0.1 * jax.random.normal(kbe, (COUT,), jnp.float32)

    # block_m=256 -> M=512 splits into 2 tiles, exercising the tiled,
    # multi-step accumulation path (default block_m=512 for production shapes).
    out = conv_bn_layer(x, weight, bias, gamma, beta,
                        kernel_size=K, stride=1, groups=1, is_relu=IS_RELU,
                        block_m=256)
    out = jax.block_until_ready(out)

    ref = conv_bn_reference(x, weight, bias, gamma, beta,
                            kernel_size=K, stride=1, is_relu=IS_RELU)
    ref = jax.block_until_ready(ref)

    assert out.shape == (N, COUT, H, W), out.shape
    max_err = float(jnp.max(jnp.abs(out - ref)))
    assert jnp.allclose(out, ref, atol=1e-4, rtol=1e-4), max_err
    print("KERNEL_OK")
</pallas_src>

<mosaic_0001>
module attributes {stable_mosaic.version = 11 : i64} {
  func.func @_conv_stats_kernel(%arg0: i32, %arg1: memref<256x36xf32, #tpu.memory_space<vmem>>, %arg2: memref<36x128xf32, #tpu.memory_space<vmem>>, %arg3: memref<256x128xf32, #tpu.memory_space<vmem>>, %arg4: memref<2x128xf32, #tpu.memory_space<vmem>>, %arg5: memref<1x128xf32, #tpu.memory_space<vmem>>, %arg6: memref<1x128xf32, #tpu.memory_space<vmem>>) attributes {dimension_semantics = [#tpu.dimension_semantics<arbitrary>], iteration_bounds = array<i64: 2>, scalar_prefetch = 0 : i64, scratch_operands = 2 : i64, tpu.core_type = #tpu.core_type<tc>, window_params = [{transform_indices = @transform_0, window_bounds = array<i64: 256, 36>}, {pipeline_mode = #tpu.pipeline_mode<synchronous>, transform_indices = @transform_1, window_bounds = array<i64: 36, 128>}, {transform_indices = @transform_2, window_bounds = array<i64: 256, 128>}, {pipeline_mode = #tpu.pipeline_mode<synchronous>, transform_indices = @transform_3, window_bounds = array<i64: 2, 128>}]} {
    %c0_i32 = arith.constant 0 : i32
    %0 = arith.cmpi eq, %arg0, %c0_i32 : i32
    %1 = arith.extui %0 : i1 to i32
    %c0_i32_0 = arith.constant 0 : i32
    %2 = arith.cmpi ne, %1, %c0_i32_0 : i32
    scf.if %2 {
      %cst_17 = arith.constant 0.000000e+00 : f32
      %21 = vector.broadcast %cst_17 : f32 to vector<1x128xf32>
      %c0_18 = arith.constant 0 : index
      %c0_19 = arith.constant 0 : index
      %22 = vector.load %arg5[%c0_18, %c0_19] : memref<1x128xf32, #tpu.memory_space<vmem>>, vector<1x128xf32>
      tpu.vector_store %arg5[%c0_18, %c0_19], %21 {strides = array<i32>} : memref<1x128xf32, #tpu.memory_space<vmem>>, vector<1x128xf32>,
      %cst_20 = arith.constant 0.000000e+00 : f32
      %23 = vector.broadcast %cst_20 : f32 to vector<1x128xf32>
      %c0_21 = arith.constant 0 : index
      %c0_22 = arith.constant 0 : index
      %24 = vector.load %arg6[%c0_21, %c0_22] : memref<1x128xf32, #tpu.memory_space<vmem>>, vector<1x128xf32>
      tpu.vector_store %arg6[%c0_21, %c0_22], %23 {strides = array<i32>} : memref<1x128xf32, #tpu.memory_space<vmem>>, vector<1x128xf32>,
    } else {
    }
    %c0 = arith.constant 0 : index
    %c0_1 = arith.constant 0 : index
    %3 = vector.load %arg1[%c0, %c0_1] : memref<256x36xf32, #tpu.memory_space<vmem>>, vector<256x36xf32>
    %c0_2 = arith.constant 0 : index
    %c0_3 = arith.constant 0 : index
    %4 = vector.load %arg2[%c0_2, %c0_3] : memref<36x128xf32, #tpu.memory_space<vmem>>, vector<36x128xf32>
    %cst = arith.constant dense<0.000000e+00> : vector<256x128xf32>
    %5 = tpu.matmul %3, %4, %cst {dimension_numbers = #tpu.dot_dimension_numbers<[1], [0], [0], [1], [0, 0, 1, 1], [], []>} : vector<256x36xf32>, vector<36x128xf32>, vector<256x128xf32> -> vector<256x128xf32>
    %c0_4 = arith.constant 0 : index
    %c0_5 = arith.constant 0 : index
    %6 = vector.load %arg3[%c0_4, %c0_5] : memref<256x128xf32, #tpu.memory_space<vmem>>, vector<256x128xf32>
    tpu.vector_store %arg3[%c0_4, %c0_5], %5 {strides = array<i32>} : memref<256x128xf32, #tpu.memory_space<vmem>>, vector<256x128xf32>,
    %c0_6 = arith.constant 0 : index
    %c0_7 = arith.constant 0 : index
    %7 = vector.load %arg5[%c0_6, %c0_7] : memref<1x128xf32, #tpu.memory_space<vmem>>, vector<1x128xf32>
    %cst_8 = arith.constant dense<0.000000e+00> : vector<128xf32>
    %8 = vector.multi_reduction <add>, %5, %cst_8 [0] : vector<256x128xf32> to vector<128xf32>
    %9 = vector.shape_cast %8 : vector<128xf32> to vector<1x128xf32>
    %10 = arith.addf %7, %9 : vector<1x128xf32>
    %c0_9 = arith.constant 0 : index
    %c0_10 = arith.constant 0 : index
    %11 = vector.load %arg5[%c0_9, %c0_10] : memref<1x128xf32, #tpu.memory_space<vmem>>, vector<1x128xf32>
    tpu.vector_store %arg5[%c0_9, %c0_10], %10 {strides = array<i32>} : memref<1x128xf32, #tpu.memory_space<vmem>>, vector<1x128xf32>,
    %c0_11 = arith.constant 0 : index
    %c0_12 = arith.constant 0 : index
    %12 = vector.load %arg6[%c0_11, %c0_12] : memref<1x128xf32, #tpu.memory_space<vmem>>, vector<1x128xf32>
    %13 = arith.mulf %5, %5 : vector<256x128xf32>
    %cst_13 = arith.constant dense<0.000000e+00> : vector<128xf32>
    %14 = vector.multi_reduction <add>, %13, %cst_13 [0] : vector<256x128xf32> to vector<128xf32>
    %15 = vector.shape_cast %14 : vector<128xf32> to vector<1x128xf32>
    %16 = arith.addf %12, %15 : vector<1x128xf32>
    %c0_14 = arith.constant 0 : index
    %c0_15 = arith.constant 0 : index
    %17 = vector.load %arg6[%c0_14, %c0_15] : memref<1x128xf32, #tpu.memory_space<vmem>>, vector<1x128xf32>
    tpu.vector_store %arg6[%c0_14, %c0_15], %16 {strides = array<i32>} : memref<1x128xf32, #tpu.memory_space<vmem>>, vector<1x128xf32>,
    %c1_i32 = arith.constant 1 : i32
    %18 = arith.cmpi eq, %arg0, %c1_i32 : i32
    %19 = arith.extui %18 : i1 to i32
    %c0_i32_16 = arith.constant 0 : i32
    %20 = arith.cmpi ne, %19, %c0_i32_16 : i32
    scf.if %20 {
      %c0_17 = arith.constant 0 : index
      %c0_18 = arith.constant 0 : index
      %21 = vector.load %arg5[%c0_17, %c0_18] : memref<1x128xf32, #tpu.memory_space<vmem>>, vector<1x128xf32>
      %cst_19 = arith.constant 0.001953125 : f32
      %22 = vector.broadcast %cst_19 : f32 to vector<1x128xf32>
      %23 = arith.mulf %21, %22 : vector<1x128xf32>
      %c0_20 = arith.constant 0 : index
      %c0_21 = arith.constant 0 : index
      %24 = vector.load %arg6[%c0_20, %c0_21] : memref<1x128xf32, #tpu.memory_space<vmem>>, vector<1x128xf32>
      %cst_22 = arith.constant 0.001953125 : f32
      %25 = vector.broadcast %cst_22 : f32 to vector<1x128xf32>
      %26 = arith.mulf %24, %25 : vector<1x128xf32>
      %27 = arith.mulf %23, %23 : vector<1x128xf32>
      %28 = arith.subf %26, %27 : vector<1x128xf32>
      %cst_23 = arith.constant 9.99999974E-6 : f32
      %29 = vector.broadcast %cst_23 : f32 to vector<1x128xf32>
      %30 = arith.addf %28, %29 : vector<1x128xf32>
      %31 = math.rsqrt %30 : vector<1x128xf32>
      %32 = tpu.concatenate %23, %31 in 0 : vector<1x128xf32>, vector<1x128xf32> -> vector<2x128xf32>
      %c0_24 = arith.constant 0 : index
      %c0_25 = arith.constant 0 : index
      %33 = vector.load %arg4[%c0_24, %c0_25] : memref<2x128xf32, #tpu.memory_space<vmem>>, vector<2x128xf32>
      tpu.vector_store %arg4[%c0_24, %c0_25], %32 {strides = array<i32>} : memref<2x128xf32, #tpu.memory_space<vmem>>, vector<2x128xf32>,
    } else {
    }
    return
  }
  func.func @transform_0(%arg0: i32) -> (i32, i32) {
    %c0_i32 = arith.constant 0 : i32
    %c0_i32_0 = arith.constant 0 : i32
    return %arg0, %c0_i32 : i32, i32
  }
  func.func @transform_1(%arg0: i32) -> (i32, i32) {
    %c0_i32 = arith.constant 0 : i32
    %c0_i32_0 = arith.constant 0 : i32
    %c0_i32_1 = arith.constant 0 : i32
    return %c0_i32, %c0_i32_0 : i32, i32
  }
  func.func @transform_2(%arg0: i32) -> (i32, i32) {
    %c0_i32 = arith.constant 0 : i32
    %c0_i32_0 = arith.constant 0 : i32
    return %arg0, %c0_i32 : i32, i32
  }
  func.func @transform_3(%arg0: i32) -> (i32, i32) {
    %c0_i32 = arith.constant 0 : i32
    %c0_i32_0 = arith.constant 0 : i32
    %c0_i32_1 = arith.constant 0 : i32
    return %c0_i32, %c0_i32_0 : i32, i32
  }
}

</mosaic_0001>

<bundles_post_ra>
// kernel: tpu_custom_call.1
= control target key start
LH: loop header
LB: loop body
LE: loop exit
PB: predicated region body
PF: predicated region fallthrough
CT: control target
= control target key end

     0   :  { %9 = vsyncpa [#allocation5], 0  ;;  %s1458_s0 = inlined_call_operand.vmem [shape: f32[512,36], index: 0, kind: input, shape index: {}]   ;;  %s1459_s1 = inlined_call_operand.vmem [shape: f32[36,128], index: 1, kind: input, shape index: {}]   ;;  %s1460_s2 = inlined_call_operand.hbm [shape: f32[512,128], index: 2, kind: output, shape index: {0}]   ;;  %s1461_s3 = inlined_call_operand.hbm [shape: f32[2,128], index: 3, kind: output, shape index: {1}]  }
   0x1   :  { %11 = vsyncpa [#allocation5 + $0x1], 0 }
   0x2   :  { %12 = vsyncpa [#allocation7], 0  ;;  %s1132_s12 = smov 0   ;;  %s1134_s13 = smov 0  }
   0x3   :  { %s1136_s14 = smov 0   ;;  %s1138_s15 = smov 0  }
   0x4 LB: > { %s1153_s16 = sadd.s32 4294967295, %s1105_s15   ;;  %s803_s17 = sadd.s32 4294967294, %s1105_s15   ;;  %s1105_s15 = sphi %s1138_s15, %s1467_s15   ;;  %s1101_s14 = sphi %s1136_s14, %s1466_s14   ;;  %s1097_s13 = sphi %s1134_s13, %s1465_s13   ;;  %s1093_s12 = sphi %s1132_s12, %s1464_s12  }
   0x5   : > { %s1157_s18 = sadd.s32 1, %s1105_s15   ;;  %s72_s19 = sadd.s32 1, %s1101_s14 }
   0x6   : > { %s69_s20 = ssub.s32 %s1105_s15, %s1157_s18  ;;  %p82_p0 = scmp.ne.s32.totalorder %s1101_s14, %s1097_s13 }
   0x7   : > { %p70_p1 = scmp.eq.s32.totalorder %s69_s20, 0  ;;  %p83_p2 = scmp.eq.s32.totalorder %s1153_s16, 1 }
   0x8   : > { %p88_p3 = scmp.ne.s32.totalorder %s1097_s13, %s1093_s12  ;;  %p89_p4 = scmp.eq.s32.totalorder %s803_s17, 1 }
   0x9   : > { %s1168_s21 = scalar_select %p70_p1, %s1101_s14, %s72_s19  }
   0xa   : > { %p1172_p5 = por %p83_p2, %p82_p0  ;;  %p1176_p6 = por %p89_p4, %p88_p3 }
   0xb   : > { %p806_p7 = scmp.ge.s32.totalorder %s1105_s15, 1  ;;  %p140_p8 = scmp.lt.s32.totalorder %s1105_s15, 3 }
   0xd   : > { %p141_p9 = pnand %p806_p7, %p140_p8 }
   0xe   : > { %s159_s24 = sand.u32 (!%p141_p9), 1, %s1097_s13   ;;  %s808_s25 = sshll.u32 (!%p141_p9), %s1153_s16, 5 }
   0xf   : > { %144 = sbr.rel (%p141_p9) target bundleno = 414 (0x19e), region = 28  ;;  %s807_s26 = sshll.u32 (!%p141_p9), %s159_s24, 8 }
  0x10   : > { %p165_p10 = scmp.lt.s32.totalorder (!%p141_p9), %s808_s25, 63  ;;  %s1191_s4 = scalar_lea.vmem (!%p141_p9), [#allocation4], %s807_s26 }
  0x11   : > { %p810_p11 = scmp.ne.s32.totalorder (!%p141_p9), %s1153_s16, 0 }
  0x16   : > { %s1469_s25 = smov (!%p165_p10, %s808_s25), 63  ;;  %174 = sbr.rel (%p810_p11) target bundleno = 29 (0x1d), region = 32 }
  0x17   : > { %s809_s27 = sshll.u32 %s1469_s25, 3  ;;  %v1107_v0 = vmov (!%p810_p11), 0.0  }
  0x18   : > { %s1189_s30 = scalar_lea.vmem %s1458_s0, %s809_s27  ;;  %175 = vst [vmem:[#allocation2] sm:$0x1] (!%p810_p11), %v1107_v0  ;;  %176 = vst [vmem:[#allocation3] sm:$0x1] (!%p810_p11), %v1107_v0 }
  0x1d PF: > { %v209_v1 = vld [vmem:[%s1459_s1] sm:$0xff]  ;;  %v210_v2 = vld [vmem:[%s1459_s1 + $0x8] sm:$0xff]  ;;  %v211_v3 = vld [vmem:[%s1459_s1 + $0x10] sm:$0xff]  ;;  %vm214_vm0 = vcmask 293888   ;;  %vm311_vm1 = vcmask 1043456   ;;  %p844_p12 = scmp.ne.s32.totalorder %s1153_s16, 1 }
  0x1e   : > { %v948_v4 = vpack.c.bf16 %v210_v2, %v209_v1  ;;  %v212_v5 = vld [vmem:[%s1459_s1 + $0x18] sm:$0xff]  ;;  %v177_v6 = vld [vmem:[%s1189_s30] sm:$0xff]  ;;  %v178_v10 = vld [vmem:[%s1189_s30 + $0x8] sm:$0xff]  ;;  %vm702_vm2 = vcmask (!%p844_p12), 1040384  }
  0x1f   : > { %v952_v7 = vpack.c.bf16 %v212_v5, %v211_v3  ;;  %900 = vmatprep.mubr.msk.f32.mxu0 %vm214_vm0, %v177_v6  ;;  %v213_v8 = vld [vmem:[%s1459_s1 + $0x20] sm:$0xf]  ;;  %v194_v11 = vld [vmem:[%s1189_s30 + $0x88] sm:$0xff]  ;;  %v179_v12 = vld [vmem:[%s1189_s30 + $0x10] sm:$0xff] }
  0x20   : > { %949 = vmatprep.subr.bf16.mxu0 %v948_v4  ;;  %956 = vmatprep.subr.bf16.mxu1 %v948_v4  ;;  %v193_v9 = vld [vmem:[%s1189_s30 + $0x80] sm:$0xff]  ;;  %v195_v13 = vld [vmem:[%s1189_s30 + $0x90] sm:$0xff]  ;;  %v180_v14 = vld [vmem:[%s1189_s30 + $0x18] sm:$0xff] }
  0x21   : > { %951 = vmatpush3.bf16.msra.mxu0 %v948_v4  ;;  %959 = vmatpush3.bf16.msra.mxu1 %v948_v4  ;;  %v196_v15 = vld [vmem:[%s1189_s30 + $0x98] sm:$0xff]  ;;  %v181_v16 = vld [vmem:[%s1189_s30 + $0x20] sm:$0xff]  ;;  %v182_v18 = vld [vmem:[%s1189_s30 + $0x28] sm:$0xff] }
  0x22   : > { %953 = vmatprep.subr.bf16.mxu0 %v952_v7  ;;  %957 = vmatprep.subr.bf16.mxu1 %v952_v7  ;;  %v197_v17 = vld [vmem:[%s1189_s30 + $0xa0] sm:$0xff]  ;;  %v198_v19 = vld [vmem:[%s1189_s30 + $0xa8] sm:$0xff]  ;;  %v183_v20 = vld [vmem:[%s1189_s30 + $0x30] sm:$0xff] }
  0x23   : > { %924 = vmatprep.mubr.msk.f32.mxu1 %vm214_vm0, %v193_v9  ;;  %v199_v21 = vld [vmem:[%s1189_s30 + $0xb0] sm:$0xff]  ;;  %v184_v22 = vld [vmem:[%s1189_s30 + $0x38] sm:$0xff]  ;;  %v185_v24 = vld [vmem:[%s1189_s30 + $0x40] sm:$0xff] }
  0x24   : > { %v200_v23 = vld [vmem:[%s1189_s30 + $0xb8] sm:$0xff]  ;;  %v201_v25 = vld [vmem:[%s1189_s30 + $0xc0] sm:$0xff]  ;;  %v186_v26 = vld [vmem:[%s1189_s30 + $0x48] sm:$0xff] }
  0x25   : > { %955 = vmatpush3.bf16.msra.mxu0 %v952_v7  ;;  %960 = vmatpush3.bf16.msra.mxu1 %v952_v7  ;;  %v202_v27 = vld [vmem:[%s1189_s30 + $0xc8] sm:$0xff]  ;;  %v187_v28 = vld [vmem:[%s1189_s30 + $0x50] sm:$0xff]  ;;  %v188_v30 = vld [vmem:[%s1189_s30 + $0x58] sm:$0xff] }
  0x26   : > { %898 = vmatprep.subr.msk.mxu0 %vm311_vm1, %v213_v8  ;;  %958 = vmatprep.subr.msk.mxu1 %vm311_vm1, %v213_v8  ;;  %v203_v29 = vld [vmem:[%s1189_s30 + $0xd0] sm:$0xff]  ;;  %v204_v31 = vld [vmem:[%s1189_s30 + $0xd8] sm:$0xff]  ;;  %v189_v32 = vld [vmem:[%s1189_s30 + $0x60] sm:$0xff] }
  0x27   : > { %v205_v33 = vld [vmem:[%s1189_s30 + $0xe0] sm:$0xff]  ;;  %v190_v34 = vld [vmem:[%s1189_s30 + $0x68] sm:$0xff]  ;;  %v191_v36 = vld [vmem:[%s1189_s30 + $0x70] sm:$0xff] }
  0x28   : > { %v206_v35 = vld [vmem:[%s1189_s30 + $0xe8] sm:$0xff]  ;;  %v207_v37 = vld [vmem:[%s1189_s30 + $0xf0] sm:$0xff]  ;;  %v192_v38 = vld [vmem:[%s1189_s30 + $0x78] sm:$0xff] }
  0x29   : > { %899 = vmatpush3.msk.msra.mxu0 %vm311_vm1, %v213_v8  ;;  %961 = vmatpush3.msk.msra.mxu1 %vm311_vm1, %v213_v8  ;;  %v208_v39 = vld [vmem:[%s1189_s30 + $0xf8] sm:$0xff] }
  0x2a   : > { %901 = vmatmul.mubr.msk.f32.vlgmr.msra.gmra.mrb[0].mxu0 %vm214_vm0, %v178_v10  ;;  %925 = vmatmul.mubr.msk.f32.vlgmr.msra.gmra.mrb[0].mxu1 %vm214_vm0, %v194_v11 }
  0x2b   : > { %903 = vmatprep.mubr.msk.f32.mxu0 %vm214_vm0, %v179_v12  ;;  %927 = vmatprep.mubr.msk.f32.mxu1 %vm214_vm0, %v195_v13 }
  0x2e   : > { %904 = vmatmul.mubr.msk.f32.gmra.mrb[2].mxu0 %vm214_vm0, %v180_v14  ;;  %928 = vmatmul.mubr.msk.f32.gmra.mrb[2].mxu1 %vm214_vm0, %v196_v15 }
  0x2f   : > { %906 = vmatprep.mubr.msk.f32.mxu0 %vm214_vm0, %v181_v16  ;;  %930 = vmatprep.mubr.msk.f32.mxu1 %vm214_vm0, %v197_v17 }
  0x32   : > { %907 = vmatmul.mubr.msk.f32.gmra.mrb[4].mxu0 %vm214_vm0, %v182_v18  ;;  %931 = vmatmul.mubr.msk.f32.gmra.mrb[4].mxu1 %vm214_vm0, %v198_v19 }
  0x33   : > { %909 = vmatprep.mubr.msk.f32.mxu0 %vm214_vm0, %v183_v20  ;;  %933 = vmatprep.mubr.msk.f32.mxu1 %vm214_vm0, %v199_v21 }
  0x36   : > { %910 = vmatmul.mubr.msk.f32.gmra.mrb[6].mxu0 %vm214_vm0, %v184_v22  ;;  %934 = vmatmul.mubr.msk.f32.gmra.mrb[6].mxu1 %vm214_vm0, %v200_v23 }
  0x37   : > { %912 = vmatprep.mubr.msk.f32.mxu0 %vm214_vm0, %v185_v24  ;;  %936 = vmatprep.mubr.msk.f32.mxu1 %vm214_vm0, %v201_v25 }
  0x3a   : > { %913 = vmatmul.mubr.msk.f32.gmra.mrb[8].mxu0 %vm214_vm0, %v186_v26  ;;  %937 = vmatmul.mubr.msk.f32.gmra.mrb[8].mxu1 %vm214_vm0, %v202_v27 }
  0x3b   : > { %915 = vmatprep.mubr.msk.f32.mxu0 %vm214_vm0, %v187_v28  ;;  %939 = vmatprep.mubr.msk.f32.mxu1 %vm214_vm0, %v203_v29 }
  0x3e   : > { %916 = vmatmul.mubr.msk.f32.gmra.mrb[10].mxu0 %vm214_vm0, %v188_v30  ;;  %940 = vmatmul.mubr.msk.f32.gmra.mrb[10].mxu1 %vm214_vm0, %v204_v31 }
  0x3f   : > { %918 = vmatprep.mubr.msk.f32.mxu0 %vm214_vm0, %v189_v32  ;;  %942 = vmatprep.mubr.msk.f32.mxu1 %vm214_vm0, %v205_v33 }
  0x42   : > { %919 = vmatmul.mubr.msk.f32.gmra.mrb[12].mxu0 %vm214_vm0, %v190_v34  ;;  %943 = vmatmul.mubr.msk.f32.gmra.mrb[12].mxu1 %vm214_vm0, %v206_v35 }
  0x43   : > { %921 = vmatprep.mubr.msk.f32.mxu0 %vm214_vm0, %v191_v36  ;;  %945 = vmatprep.mubr.msk.f32.mxu1 %vm214_vm0, %v207_v37 }
  0x46   : > { %922 = vmatmul.mubr.msk.f32.gmra.mrb[14].mxu0 %vm214_vm0, %v192_v38  ;;  %946 = vmatmul.mubr.msk.f32.gmra.mrb[14].mxu1 %vm214_vm0, %v208_v39 }
  0xfd   : > { %v902_v40 = vpop.f32.mrb[0].mxu0  ;;  %v1273_v41 = vpop.f32.mrb[0].mxu1 }
  0xfe   : > { %541 = vst [vmem:[%s1191_s4 + $0x8] sm:$0xff] %v902_v40  ;;  %v614_v42 = vmul.f32 %v902_v40, %v902_v40  ;;  %v381_v43 = vpop.f32.mrb[1].mxu0  ;;  %557 = vst [vmem:[%s1191_s4 + $0x88] sm:$0xff] %v1273_v41  ;;  %v1278_v44 = vpop.f32.mrb[1].mxu1 }
  0xff   : > { %540 = vst [vmem:[%s1191_s4] sm:$0xff] %v381_v43  ;;  %v573_v45 = vadd.f32 %v902_v40, %v381_v43  ;;  %v613_v46 = vmul.f32 %v381_v43, %v381_v43  ;;  %556 = vst [vmem:[%s1191_s4 + $0x80] sm:$0xff] %v1278_v44 }
 0x101   : > { %v645_v47 = vadd.f32 %v614_v42, %v613_v46  ;;  %v905_v48 = vpop.f32.mrb[2].mxu0  ;;  %v1283_v49 = vpop.f32.mrb[2].mxu1 }
 0x102   : > { %543 = vst [vmem:[%s1191_s4 + $0x18] sm:$0xff] %v905_v48  ;;  %v391_v50 = vpop.f32.mrb[3].mxu0  ;;  %559 = vst [vmem:[%s1191_s4 + $0x98] sm:$0xff] %v1283_v49  ;;  %v1288_v51 = vpop.f32.mrb[3].mxu1  ;;  %v616_v54 = vmul.f32 %v905_v48, %v905_v48 }
 0x103   : > { %542 = vst [vmem:[%s1191_s4 + $0x10] sm:$0xff] %v391_v50  ;;  %v574_v52 = vadd.f32 %v573_v45, %v391_v50  ;;  %v615_v53 = vmul.f32 %v391_v50, %v391_v50  ;;  %558 = vst [vmem:[%s1191_s4 + $0x90] sm:$0xff] %v1288_v51 }
 0x105   : > { %v646_v55 = vadd.f32 %v645_v47, %v615_v53  ;;  %v908_v56 = vpop.f32.mrb[4].mxu0  ;;  %v575_v57 = vadd.f32 %v905_v48, %v574_v52  ;;  %v1293_v58 = vpop.f32.mrb[4].mxu1 }
 0x106   : > { %545 = vst [vmem:[%s1191_s4 + $0x28] sm:$0xff] %v908_v56  ;;  %v401_v59 = vpop.f32.mrb[5].mxu0  ;;  %561 = vst [vmem:[%s1191_s4 + $0xa8] sm:$0xff] %v1293_v58  ;;  %v1298_v60 = vpop.f32.mrb[5].mxu1  ;;  %v618_v0 = vmul.f32 %v908_v56, %v908_v56 }
 0x107   : > { %544 = vst [vmem:[%s1191_s4 + $0x20] sm:$0xff] %v401_v59  ;;  %v576_v61 = vadd.f32 %v575_v57, %v401_v59  ;;  %v617_v62 = vmul.f32 %v401_v59, %v401_v59  ;;  %v647_v63 = vadd.f32 %v646_v55, %v616_v54  ;;  %560 = vst [vmem:[%s1191_s4 + $0xa0] sm:$0xff] %v1298_v60 }
 0x108   : > { %v629_v57 = vmul.f32 %v1278_v44, %v1278_v44 }
 0x109   : > { %v648_v1 = vadd.f32 %v647_v63, %v617_v62  ;;  %v911_v2 = vpop.f32.mrb[6].mxu0  ;;  %v577_v3 = vadd.f32 %v908_v56, %v576_v61  ;;  %v1303_v4 = vpop.f32.mrb[6].mxu1  ;;  %v630_v62 = vmul.f32 %v1273_v41, %v1273_v41 }
 0x10a   : > { %547 = vst [vmem:[%s1191_s4 + $0x38] sm:$0xff] %v911_v2  ;;  %v411_v5 = vpop.f32.mrb[7].mxu0  ;;  %563 = vst [vmem:[%s1191_s4 + $0xb8] sm:$0xff] %v1303_v4  ;;  %v1308_v6 = vpop.f32.mrb[7].mxu1  ;;  %v620_v10 = vmul.f32 %v911_v2, %v911_v2 }
 0x10b   : > { %546 = vst [vmem:[%s1191_s4 + $0x30] sm:$0xff] %v411_v5  ;;  %v578_v7 = vadd.f32 %v577_v3, %v411_v5  ;;  %v619_v8 = vmul.f32 %v411_v5, %v411_v5  ;;  %v649_v9 = vadd.f32 %v648_v1, %v618_v0  ;;  %562 = vst [vmem:[%s1191_s4 + $0xb0] sm:$0xff] %v1308_v6 }
 0x10c   : > { %v631_v1 = vmul.f32 %v1288_v51, %v1288_v51  ;;  %v632_v5 = vmul.f32 %v1283_v49, %v1283_v49 }
 0x10d   : > { %v650_v11 = vadd.f32 %v649_v9, %v619_v8  ;;  %v914_v12 = vpop.f32.mrb[8].mxu0  ;;  %v579_v13 = vadd.f32 %v911_v2, %v578_v7  ;;  %v1313_v14 = vpop.f32.mrb[8].mxu1 }
 0x10e   : > { %549 = vst [vmem:[%s1191_s4 + $0x48] sm:$0xff] %v914_v12  ;;  %v421_v15 = vpop.f32.mrb[9].mxu0  ;;  %565 = vst [vmem:[%s1191_s4 + $0xc8] sm:$0xff] %v1313_v14  ;;  %v1318_v16 = vpop.f32.mrb[9].mxu1  ;;  %v622_v20 = vmul.f32 %v914_v12, %v914_v12 }
 0x10f   : > { %548 = vst [vmem:[%s1191_s4 + $0x40] sm:$0xff] %v421_v15  ;;  %v580_v17 = vadd.f32 %v579_v13, %v421_v15  ;;  %v621_v18 = vmul.f32 %v421_v15, %v421_v15  ;;  %v651_v19 = vadd.f32 %v650_v11, %v620_v10  ;;  %564 = vst [vmem:[%s1191_s4 + $0xc0] sm:$0xff] %v1318_v16 }
 0x111   : > { %v652_v21 = vadd.f32 %v651_v19, %v621_v18  ;;  %v917_v22 = vpop.f32.mrb[10].mxu0  ;;  %v581_v23 = vadd.f32 %v914_v12, %v580_v17  ;;  %v1323_v24 = vpop.f32.mrb[10].mxu1 }
 0x112   : > { %551 = vst [vmem:[%s1191_s4 + $0x58] sm:$0xff] %v917_v22  ;;  %v431_v25 = vpop.f32.mrb[11].mxu0  ;;  %567 = vst [vmem:[%s1191_s4 + $0xd8] sm:$0xff] %v1323_v24  ;;  %v1328_v26 = vpop.f32.mrb[11].mxu1  ;;  %v624_v30 = vmul.f32 %v917_v22, %v917_v22 }
 0x113   : > { %550 = vst [vmem:[%s1191_s4 + $0x50] sm:$0xff] %v431_v25  ;;  %v582_v27 = vadd.f32 %v581_v23, %v431_v25  ;;  %v623_v28 = vmul.f32 %v431_v25, %v431_v25  ;;  %v653_v29 = vadd.f32 %v652_v21, %v622_v20  ;;  %566 = vst [vmem:[%s1191_s4 + $0xd0] sm:$0xff] %v1328_v26 }
 0x115   : > { %v654_v31 = vadd.f32 %v653_v29, %v623_v28  ;;  %v920_v32 = vpop.f32.mrb[12].mxu0  ;;  %v583_v33 = vadd.f32 %v917_v22, %v582_v27  ;;  %v1333_v34 = vpop.f32.mrb[12].mxu1 }
 0x116   : > { %553 = vst [vmem:[%s1191_s4 + $0x68] sm:$0xff] %v920_v32  ;;  %v441_v35 = vpop.f32.mrb[13].mxu0  ;;  %569 = vst [vmem:[%s1191_s4 + $0xe8] sm:$0xff] %v1333_v34  ;;  %v521_v36 = vpop.f32.mrb[13].mxu1  ;;  %v626_v40 = vmul.f32 %v920_v32, %v920_v32 }
 0x117   : > { %552 = vst [vmem:[%s1191_s4 + $0x60] sm:$0xff] %v441_v35  ;;  %v584_v37 = vadd.f32 %v583_v33, %v441_v35  ;;  %v625_v38 = vmul.f32 %v441_v35, %v441_v35  ;;  %v655_v39 = vadd.f32 %v654_v31, %v624_v30  ;;  %568 = vst [vmem:[%s1191_s4 + $0xe0] sm:$0xff] %v521_v36 }
 0x118   : > { %v642_v31 = vmul.f32 %v1333_v34, %v1333_v34 }
 0x119   : > { %v656_v42 = vadd.f32 %v655_v39, %v625_v38  ;;  %v923_v43 = vpop.f32.mrb[14].mxu0  ;;  %v585_v45 = vadd.f32 %v920_v32, %v584_v37  ;;  %v947_v46 = vpop.f32.mrb[14].mxu1 }
 0x11a   : > { %555 = vst [vmem:[%s1191_s4 + $0x78] sm:$0xff] %v923_v43  ;;  %v451_v47 = vpop.f32.mrb[15].mxu0  ;;  %571 = vst [vmem:[%s1191_s4 + $0xf8] sm:$0xff] %v947_v46  ;;  %v531_v48 = vpop.f32.mrb[15].mxu1  ;;  %v628_v54 = vmul.f32 %v923_v43, %v923_v43 }
 0x11b   : > { %554 = vst [vmem:[%s1191_s4 + $0x70] sm:$0xff] %v451_v47  ;;  %v586_v50 = vadd.f32 %v585_v45, %v451_v47  ;;  %v627_v52 = vmul.f32 %v451_v47, %v451_v47  ;;  %v657_v53 = vadd.f32 %v656_v42, %v626_v40  ;;  %570 = vst [vmem:[%s1191_s4 + $0xf0] sm:$0xff] %v531_v48 }
 0x11c   : > { %v643_v33 = vmul.f32 %v531_v48, %v531_v48 }
 0x11d   : > { %v587_v55 = vadd.f32 %v923_v43, %v586_v50  ;;  %v658_v56 = vadd.f32 %v657_v53, %v627_v52 }
 0x11f   : > { %v659_v59 = vadd.f32 %v658_v56, %v628_v54  ;;  %v588_v61 = vadd.f32 %v587_v55, %v1278_v44  ;;  %v633_v44 = vmul.f32 %v1298_v60, %v1298_v60  ;;  %v572_v54 = vld [vmem:[#allocation2] sm:$0x1] }
 0x121   : > { %v660_v63 = vadd.f32 %v659_v59, %v629_v57  ;;  %v589_v0 = vadd.f32 %v1273_v41, %v588_v61  ;;  %v634_v41 = vmul.f32 %v1293_v58, %v1293_v58 }
 0x123   : > { %v590_v2 = vadd.f32 %v589_v0, %v1288_v51  ;;  %v661_v3 = vadd.f32 %v660_v63, %v630_v62  ;;  %v635_v51 = vmul.f32 %v1308_v6, %v1308_v6 }
 0x125   : > { %v662_v7 = vadd.f32 %v661_v3, %v631_v1  ;;  %v591_v8 = vadd.f32 %v1283_v49, %v590_v2  ;;  %v636_v49 = vmul.f32 %v1303_v4, %v1303_v4  ;;  %v697_v3 = vlaneseq (!%p844_p12) }
 0x127   : > { %v592_v9 = vadd.f32 %v591_v8, %v1298_v60  ;;  %v663_v10 = vadd.f32 %v662_v7, %v632_v5  ;;  %v637_v60 = vmul.f32 %v1318_v16, %v1318_v16  ;;  %v698_v5 = vshrl.u32 (!%p844_p12), %v697_v3, 7 }
 0x129   : > { %v664_v11 = vadd.f32 %v663_v10, %v633_v44  ;;  %v593_v12 = vadd.f32 %v1293_v58, %v592_v9  ;;  %v638_v58 = vmul.f32 %v1313_v14, %v1313_v14  ;;  %v699_v7 = vsub.s32 (!%p844_p12), 0, %v698_v5 }
 0x12b   : > { %v594_v13 = vadd.f32 %v593_v12, %v1308_v6  ;;  %v665_v15 = vadd.f32 %v664_v11, %v634_v41  ;;  %v639_v6 = vmul.f32 %v1328_v26, %v1328_v26 }
 0x12d   : > { %v666_v17 = vadd.f32 %v665_v15, %v635_v51  ;;  %v595_v18 = vadd.f32 %v1303_v4, %v594_v13  ;;  %v640_v4 = vmul.f32 %v1323_v24, %v1323_v24 }
 0x12f   : > { %v596_v19 = vadd.f32 %v595_v18, %v1318_v16  ;;  %v667_v20 = vadd.f32 %v666_v17, %v636_v49  ;;  %v641_v16 = vmul.f32 %v521_v36, %v521_v36 }
 0x131   : > { %v668_v21 = vadd.f32 %v667_v20, %v637_v60  ;;  %v597_v22 = vadd.f32 %v1313_v14, %v596_v19 }
 0x133   : > { %v598_v23 = vadd.f32 %v597_v22, %v1328_v26  ;;  %v669_v25 = vadd.f32 %v668_v21, %v638_v58  ;;  %v644_v26 = vmul.f32 %v947_v46, %v947_v46 }
 0x135   : > { %v670_v27 = vadd.f32 %v669_v25, %v639_v6  ;;  %v599_v28 = vadd.f32 %v1323_v24, %v598_v23 }
 0x137   : > { %v600_v29 = vadd.f32 %v599_v28, %v521_v36  ;;  %v671_v30 = vadd.f32 %v670_v27, %v640_v4 }
 0x139   : > { %v672_v32 = vadd.f32 %v671_v30, %v641_v16  ;;  %v601_v14 = vadd.f32 %v1333_v34, %v600_v29  ;;  %v612_v34 = vld [vmem:[#allocation3] sm:$0x1] }
 0x13b   : > { %v602_v35 = vadd.f32 %v601_v14, %v531_v48  ;;  %v673_v37 = vadd.f32 %v672_v32, %v642_v31 }
 0x13d   : > { %v603_v38 = vadd.f32 %v947_v46, %v602_v35  ;;  %v674_v39 = vadd.f32 %v673_v37, %v643_v33 }
 0x13f   : > { %v604_v40 = vrot.slane %v603_v38, 4  ;;  %v675_v42 = vadd.f32 %v674_v39, %v644_v26 }
 0x141   : > { %v605_v43 = vadd.f32 %v604_v40, %v603_v38  ;;  %v676_v45 = vrot.slane %v675_v42, 4 }
 0x143   : > { %v606_v24 = vrot.slane %v605_v43, 2  ;;  %v677_v47 = vadd.f32 %v676_v45, %v675_v42 }
 0x145   : > { %v607_v36 = vadd.f32 %v606_v24, %v605_v43  ;;  %v678_v50 = vrot.slane %v677_v47, 2 }
 0x147   : > { %v608_v52 = vrot.slane %v607_v36, 1  ;;  %v679_v53 = vadd.f32 %v678_v50, %v677_v47 }
 0x149   : > { %v609_v55 = vadd.f32 %v608_v52, %v607_v36  ;;  %v680_v56 = vrot.slane %v679_v53, 1  ;;  %687 = sbr.rel (%p844_p12) target bundleno = 364 (0x16c), region = 36 }
 0x14b   : > { %v610_v57 = vadd.f32 %v609_v55, %v572_v54  ;;  %v681_v48 = vadd.f32 %v680_v56, %v679_v53 }
 0x14d   : > { %611 = vst [vmem:[#allocation2] sm:$0x1] %v610_v57  ;;  %v682_v59 = vadd.f32 %v681_v48, %v612_v34 }
 0x14f   : > { %683 = vst [vmem:[#allocation3] sm:$0x1] %v682_v59 }
 0x154   : > { %v688_v46 = vld [vmem:[#allocation2] sm:$0x1] }
 0x155   : > { %v689_v62 = vmul.f32 0.001953125, %v688_v46 }
 0x156   : > { %v690_v61 = vld [vmem:[#allocation3] sm:$0x1] }
 0x157   : > { %v691_v63 = vmul.f32 0.001953125, %v690_v61  ;;  %v692_v0 = vmul.f32 %v689_v62, %v689_v62 }
 0x159   : > { %v693_v1 = vsub.f32 %v691_v63, %v692_v0 }
 0x15b   : > { %v694_v2 = vadd.f32 1e-05, %v693_v1 }
 0x15d   : > { %1011 = vrsqrt.f32 %v694_v2 }
 0x167   : > { %v1012_v8 = vpop.eup %1011 }
 0x168   : > { %v700_v44 = vrot.slane %v1012_v8, %v699_v7 }
 0x16a   : > { %v703_v9 = vsel %vm702_vm2, %v689_v62, %v700_v44 }
 0x16b   : > { %704 = vst [vmem:[#allocation6] sm:$0x3] %v703_v9 }
 0x16c PF: > { %s852_s25 = sshll.u32 %s1153_s16, 12  ;;  %s719_s29 = sshll.u32 %s1191_s4, 4  ;;  %s1391_s29 = int_to_ptr.vmem [resolvable:$true] %s719_s29 }
 0x16d   : > { %s1388_s28 = scalar_lea.hbm %s1460_s2, %s852_s25  ;;  %s1395_s30 = scalar_lea.sflag [#allocation5], %s159_s24 }
 0x16e   : > { %s1013_s5 = scalar_lea.vmem %s1391_s29, 4096  ;;  %s1108_s6 = smov [#allocation4]  }
 0x16f   : > { %p1014_p13 = scmp.ne.s32.totalorder %s1391_s29, %s1013_s5  ;;  %s1017_s7 = sshll.u32 %s1108_s6, 4  ;;  %s1018_s7 = int_to_ptr.vmem [resolvable:$false] %s1017_s7 }
 0x170   : > { %s1019_s8 = scalar_lea.vmem %s1018_s7, 8192  ;;  %p1020_p3 = scmp.lt.s32.totalorder %s1391_s29, %s1018_s7 }
 0x171   : > { %p1015_p0 = pnand %p1014_p13, %p1172_p5  ;;  %p1021_p4 = scmp.lt.s32.totalorder %s1019_s8, %s1013_s5 }
 0x173   : > { %p1016_p1 = pneg %p1015_p0  ;;  %p1022_p7 = por %p1021_p4, %p1020_p3 }
 0x175   : > { %p1023_p8 = pnand %p1022_p7, %p1016_p1 }
 0x177   : > { %1026 = shalt.err (!%p1023_p8)
}
 0x178   : > { %s1027_s24 = scalar_lea.hbm %s1388_s28, 4096  ;;  %s1031_s10 = scalar_lea.hbm %s1460_s2, 8192 }
 0x179   : > { %p1028_p9 = scmp.ne.s32.totalorder %s1388_s28, %s1027_s24  ;;  %p1032_p12 = scmp.lt.u32.totalorder %s1388_s28, %s1460_s2 }
 0x17a   : > { %p1033_p13 = scmp.lt.u32.totalorder %s1031_s10, %s1027_s24  ;;  %p1035_p1 = scmp.lt.u32.totalorder %s1027_s24, %s1388_s28 }
 0x17b   : > { %p1029_p10 = pnand %p1028_p9, %p1172_p5 }
 0x17c   : > { %p1034_p0 = por %p1033_p13, %p1032_p12 }
 0x17d   : > { %p1030_p11 = pneg %p1029_p10 }
 0x17e   : > { %p1036_p3 = por %p1035_p1, %p1034_p0 }
 0x180   : > { %p1037_p4 = pnand %p1036_p3, %p1030_p11 }
 0x182   : > { %1040 = shalt.err (!%p1037_p4)
}
 0x183   : > { %s1109_s19 = smov 128   ;;  %s1110_s20 = smov 8  }
 0x184   : > { %962 = dma.vmem_to_hbm [thread:$0]  (%p1172_p5), %s1391_s29, 4096, %s1388_s28, %s1395_s30, %s1109_s19, %s1109_s19, %s1110_s20  }
 0x185   : > { %s1111_s25 = smov [#allocation6]  }
 0x186   : > { %s733_s26 = sshll.u32 %s1111_s25, 4  ;;  %s734_s26 = int_to_ptr.vmem [resolvable:$true] %s733_s26 }
 0x187   : > { %s1041_s27 = scalar_lea.vmem %s734_s26, 32  ;;  %p1048_p10 = scmp.lt.s32.totalorder %s734_s26, %s734_s26 }
 0x188   : > { %p1042_p7 = scmp.ne.s32.totalorder %s734_s26, %s1041_s27  ;;  %p1049_p11 = scmp.lt.s32.totalorder %s1041_s27, %s1041_s27 }
 0x18a   : > { %p1043_p8 = pnand %p1042_p7, %p83_p2  ;;  %p1050_p12 = por %p1049_p11, %p1048_p10 }
 0x18c   : > { %p1044_p9 = pneg %p1043_p8 }
 0x18e   : > { %p1051_p13 = pnand %p1050_p12, %p1044_p9 }
 0x190   : > { %1054 = shalt.err (!%p1051_p13)
}
 0x191   : > { %s1055_s7 = scalar_lea.hbm %s1461_s3, 32 }
 0x192   : > { %p1056_p5 = scmp.ne.s32.totalorder %s1461_s3, %s1055_s7  ;;  %p1061_p3 = scmp.lt.u32.totalorder %s1055_s7, %s1461_s3 }
 0x194   : > { %p1057_p0 = pnand %p1056_p5, %p83_p2 }
 0x196   : > { %p1058_p1 = pneg %p1057_p0 }
 0x198   : > { %p1063_p4 = pnand %p1061_p3, %p1058_p1 }
 0x19a   : > { %1066 = shalt.err (!%p1063_p4)
}
 0x19b   : > { %964 = dma.vmem_to_hbm [thread:$0]  (%p83_p2), %s734_s26, 32, %s1461_s3, [#allocation7]  }
 0x19c   : > { %1084 = dma.done.wait (%p83_p2), [#allocation7], 32  }
 0x19d   : > { %1086 = vsyncadd (%p83_p2), [#allocation7], 4294967264 }
 0x19e PF: > { %p974_p7 = scmp.ge.s32.totalorder %s1105_s15, 2  ;;  %s749_s4 = sand.u32 1, %s1093_s12  }
 0x19f   : > { %s750_s9 = scalar_lea.sflag [#allocation5], %s749_s4 }
 0x1a0   : > { %p969_p8 = pnand %p974_p7, %p1176_p6 }
 0x1a2   : > { %1088 = dma.done.wait (!%p969_p8), %s750_s9, 4096  }
 0x1a3   : > { %1090 = vsyncadd (!%p969_p8), %s750_s9, 4294963200  ;;  %p15_p9 = scmp.ge.s32.totalorder %s1157_s18, 4   ;;  %s1464_s12 = smov %s1097_s13 }
 0x1a4   : > { %s1465_s13 = smov %s1101_s14  ;;  %s1466_s14 = smov %s1168_s21 }
 0x1a5   : > { %s1467_s15 = smov %s1157_s18  ;;  %17 = sbr.rel (!%p15_p9) target bundleno = 4 (0x4), region = 79 }
 0x1ac   :  { %755 = vsyncpa [#allocation5], 1 }
 0x1ad   :  { %757 = vsyncpa [#allocation5 + $0x1], 1 }
 0x1ae   :  { %758 = vsyncpa [#allocation7], 1 }

</bundles_post_ra>
